<compile_context>
chip_gen: v7x
topology: tpu7x:2x2x1
jax: 0.10.0
libtpu: 0.0.40
codegen_flags: <defaults>
</compile_context>

<pallas_src>
import functools

import jax
import jax.numpy as jnp
from jax.experimental import pallas as pl
from jax.experimental.pallas import tpu as pltpu

_LN_EPS = 1e-5  # PyTorch nn.LayerNorm default


def _round_up(x, m):
    return ((x + m - 1) // m) * m


def _layernorm_f32(h, gamma, beta, eps):
    """LayerNorm over the last axis, PyTorch semantics (biased variance)."""
    mu = jnp.mean(h, axis=-1, keepdims=True)
    c = h - mu
    var = jnp.mean(c * c, axis=-1, keepdims=True)
    return c * jax.lax.rsqrt(var + eps) * gamma + beta


# --------------------------------------------------------------------------
# Fused Pallas kernel: Linear -> LN -> ReLU -> Linear -> LN -> ReLU
# --------------------------------------------------------------------------
def _encoder_kernel(x_ref, w1_ref, b1_ref, g1_ref, be1_ref,
                    w2_ref, b2_ref, g2_ref, be2_ref, o_ref, *, eps):
    # ---- layer 1: Linear(F, 128) + LayerNorm(128) + ReLU -----------------
    x = x_ref[...].astype(w1_ref.dtype)                       # bf16 MXU operand
    h = jnp.dot(x, w1_ref[...], preferred_element_type=jnp.float32)
    h = h + b1_ref[...]
    h = _layernorm_f32(h, g1_ref[...], be1_ref[...], eps)
    h = jnp.maximum(h, 0.0)

    # ---- layer 2: Linear(128, 256) + LayerNorm(256) + ReLU ---------------
    h = jnp.dot(h.astype(w2_ref.dtype), w2_ref[...],
                preferred_element_type=jnp.float32)
    h = h + b2_ref[...]
    h = _layernorm_f32(h, g2_ref[...], be2_ref[...], eps)
    o_ref[...] = jnp.maximum(h, 0.0).astype(o_ref.dtype)


def clinical_metadata_encoder(params, clinical_data, *, block_m=256):
    """Mirror of ClinicalMetadataEncoder.forward (eval semantics)."""
    if clinical_data is None:      # PyTorch: `if clinical_data is None: return None`
        return None

    x = jnp.asarray(clinical_data, jnp.float32)
    B, F = x.shape
    H1 = params["w1"].shape[1]
    H2 = params["w2"].shape[1]

    # Batch tile: multiple of 8 sublanes, up to block_m rows per grid step.
    tm = min(block_m, _round_up(B, 8))
    Mp = _round_up(B, tm)
    if Mp != B:
        x = jnp.pad(x, ((0, Mp - B), (0, 0)))   # pad rows; sliced off below

    row = lambda v: v.reshape(1, -1).astype(jnp.float32)

    out = pl.pallas_call(
        functools.partial(_encoder_kernel, eps=_LN_EPS),
        out_shape=jax.ShapeDtypeStruct((Mp, H2), jnp.float32),
        grid=(Mp // tm,),
        in_specs=[
            pl.BlockSpec((tm, F), lambda i: (i, 0)),    # activations: tiled over batch
            pl.BlockSpec((F, H1), lambda i: (0, 0)),    # w1 (broadcast)
            pl.BlockSpec((1, H1), lambda i: (0, 0)),    # b1
            pl.BlockSpec((1, H1), lambda i: (0, 0)),    # ln1 gamma
            pl.BlockSpec((1, H1), lambda i: (0, 0)),    # ln1 beta
            pl.BlockSpec((H1, H2), lambda i: (0, 0)),   # w2 (broadcast)
            pl.BlockSpec((1, H2), lambda i: (0, 0)),    # b2
            pl.BlockSpec((1, H2), lambda i: (0, 0)),    # ln2 gamma
            pl.BlockSpec((1, H2), lambda i: (0, 0)),    # ln2 beta
        ],
        out_specs=pl.BlockSpec((tm, H2), lambda i: (i, 0)),
        compiler_params=pltpu.CompilerParams(
            dimension_semantics=("parallel",)),
    )(x,
      params["w1"].astype(jnp.bfloat16),
      row(params["b1"]), row(params["g1"]), row(params["beta1"]),
      params["w2"].astype(jnp.bfloat16),
      row(params["b2"]), row(params["g2"]), row(params["beta2"]))

    return out[:B]


# --------------------------------------------------------------------------
# Deterministic parameter init (PyTorch-default-style) + pure-JAX reference
# --------------------------------------------------------------------------
def init_params(key, num_clinical_features=10, h1=128, h2=256):
    k1, k2, k3, k4 = jax.random.split(key, 4)
    lim1 = 1.0 / jnp.sqrt(float(num_clinical_features))
    lim2 = 1.0 / jnp.sqrt(float(h1))
    return {
        # weights stored as (in, out) so the kernel computes x @ W
        "w1": jax.random.uniform(k1, (num_clinical_features, h1),
                                 jnp.float32, -lim1, lim1),
        "b1": jax.random.uniform(k2, (h1,), jnp.float32, -lim1, lim1),
        "g1": jnp.ones((h1,), jnp.float32),
        "beta1": jnp.zeros((h1,), jnp.float32),
        "w2": jax.random.uniform(k3, (h1, h2), jnp.float32, -lim2, lim2),
        "b2": jax.random.uniform(k4, (h2,), jnp.float32, -lim2, lim2),
        "g2": jnp.ones((h2,), jnp.float32),
        "beta2": jnp.zeros((h2,), jnp.float32),
    }


def reference_forward(params, x):
    h = x @ params["w1"] + params["b1"]
    h = _layernorm_f32(h, params["g1"], params["beta1"], _LN_EPS)
    h = jnp.maximum(h, 0.0)
    h = h @ params["w2"] + params["b2"]
    h = _layernorm_f32(h, params["g2"], params["beta2"], _LN_EPS)
    return jnp.maximum(h, 0.0)


# --------------------------------------------------------------------------
if __name__ == "__main__":
    key = jax.random.PRNGKey(0)
    k_param, k_x = jax.random.split(key)

    params = init_params(k_param, num_clinical_features=10)
    x = jax.random.normal(k_x, (2, 10), jnp.float32)     # (batch, clinical feats)

    fwd = jax.jit(clinical_metadata_encoder)
    out = jax.block_until_ready(fwd(params, x))

    assert out.shape == (2, 256), out.shape
    assert bool(jnp.all(jnp.isfinite(out)))
    assert bool(jnp.all(out >= 0.0))                       # final ReLU

    ref = reference_forward(params, x)
    rel_err = jnp.linalg.norm(out - ref) / (jnp.linalg.norm(ref) + 1e-8)
    assert float(rel_err) < 5e-2, float(rel_err)

    # None pass-through, as in the PyTorch forward.
    assert clinical_metadata_encoder(params, None) is None

    print("KERNEL_OK")
</pallas_src>

<mosaic_0001>
module attributes {stable_mosaic.version = 11 : i64} {
  func.func @_encoder_kernel(%arg0: i32, %arg1: memref<8x10xf32, #tpu.memory_space<vmem>>, %arg2: memref<10x128xbf16, #tpu.memory_space<vmem>>, %arg3: memref<1x128xf32, #tpu.memory_space<vmem>>, %arg4: memref<1x128xf32, #tpu.memory_space<vmem>>, %arg5: memref<1x128xf32, #tpu.memory_space<vmem>>, %arg6: memref<128x256xbf16, #tpu.memory_space<vmem>>, %arg7: memref<1x256xf32, #tpu.memory_space<vmem>>, %arg8: memref<1x256xf32, #tpu.memory_space<vmem>>, %arg9: memref<1x256xf32, #tpu.memory_space<vmem>>, %arg10: memref<8x256xf32, #tpu.memory_space<vmem>>) attributes {dimension_semantics = [#tpu.dimension_semantics<parallel>], iteration_bounds = array<i64: 1>, scalar_prefetch = 0 : i64, scratch_operands = 0 : i64, tpu.core_type = #tpu.core_type<tc>, window_params = [{transform_indices = @transform_0, window_bounds = array<i64: 8, 10>}, {pipeline_mode = #tpu.pipeline_mode<synchronous>, transform_indices = @transform_1, window_bounds = array<i64: 10, 128>}, {pipeline_mode = #tpu.pipeline_mode<synchronous>, transform_indices = @transform_2, window_bounds = array<i64: 1, 128>}, {pipeline_mode = #tpu.pipeline_mode<synchronous>, transform_indices = @transform_3, window_bounds = array<i64: 1, 128>}, {pipeline_mode = #tpu.pipeline_mode<synchronous>, transform_indices = @transform_4, window_bounds = array<i64: 1, 128>}, {pipeline_mode = #tpu.pipeline_mode<synchronous>, transform_indices = @transform_5, window_bounds = array<i64: 128, 256>}, {pipeline_mode = #tpu.pipeline_mode<synchronous>, transform_indices = @transform_6, window_bounds = array<i64: 1, 256>}, {pipeline_mode = #tpu.pipeline_mode<synchronous>, transform_indices = @transform_7, window_bounds = array<i64: 1, 256>}, {pipeline_mode = #tpu.pipeline_mode<synchronous>, transform_indices = @transform_8, window_bounds = array<i64: 1, 256>}, {transform_indices = @transform_9, window_bounds = array<i64: 8, 256>}]} {
    %c0 = arith.constant 0 : index
    %c0_0 = arith.constant 0 : index
    %0 = vector.load %arg1[%c0, %c0_0] : memref<8x10xf32, #tpu.memory_space<vmem>>, vector<8x10xf32>
    %1 = arith.truncf %0 : vector<8x10xf32> to vector<8x10xbf16>
    %c0_1 = arith.constant 0 : index
    %c0_2 = arith.constant 0 : index
    %2 = vector.load %arg2[%c0_1, %c0_2] : memref<10x128xbf16, #tpu.memory_space<vmem>>, vector<10x128xbf16>
    %cst = arith.constant dense<0.000000e+00> : vector<8x128xf32>
    %3 = tpu.matmul %1, %2, %cst {dimension_numbers = #tpu.dot_dimension_numbers<[1], [0], [0], [1], [0, 0, 1, 1], [], []>} : vector<8x10xbf16>, vector<10x128xbf16>, vector<8x128xf32> -> vector<8x128xf32>
    %c0_3 = arith.constant 0 : index
    %c0_4 = arith.constant 0 : index
    %4 = vector.load %arg3[%c0_3, %c0_4] : memref<1x128xf32, #tpu.memory_space<vmem>>, vector<1x128xf32>
    %5 = vector.broadcast %4 : vector<1x128xf32> to vector<8x128xf32>
    %6 = arith.addf %3, %5 : vector<8x128xf32>
    %c0_5 = arith.constant 0 : index
    %c0_6 = arith.constant 0 : index
    %7 = vector.load %arg4[%c0_5, %c0_6] : memref<1x128xf32, #tpu.memory_space<vmem>>, vector<1x128xf32>
    %c0_7 = arith.constant 0 : index
    %c0_8 = arith.constant 0 : index
    %8 = vector.load %arg5[%c0_7, %c0_8] : memref<1x128xf32, #tpu.memory_space<vmem>>, vector<1x128xf32>
    %cst_9 = arith.constant dense<0.000000e+00> : vector<8xf32>
    %9 = vector.multi_reduction <add>, %6, %cst_9 [1] : vector<8x128xf32> to vector<8xf32>
    %10 = vector.shape_cast %9 : vector<8xf32> to vector<8x1xf32>
    %cst_10 = arith.constant 1.280000e+02 : f32
    %11 = vector.broadcast %cst_10 : f32 to vector<8x1xf32>
    %12 = arith.divf %10, %11 : vector<8x1xf32>
    %13 = vector.broadcast %12 : vector<8x1xf32> to vector<8x128xf32>
    %14 = arith.subf %6, %13 : vector<8x128xf32>
    %15 = arith.mulf %14, %14 : vector<8x128xf32>
    %cst_11 = arith.constant dense<0.000000e+00> : vector<8xf32>
    %16 = vector.multi_reduction <add>, %15, %cst_11 [1] : vector<8x128xf32> to vector<8xf32>
    %17 = vector.shape_cast %16 : vector<8xf32> to vector<8x1xf32>
    %cst_12 = arith.constant 1.280000e+02 : f32
    %18 = vector.broadcast %cst_12 : f32 to vector<8x1xf32>
    %19 = arith.divf %17, %18 : vector<8x1xf32>
    %cst_13 = arith.constant 9.99999974E-6 : f32
    %20 = vector.broadcast %cst_13 : f32 to vector<8x1xf32>
    %21 = arith.addf %19, %20 : vector<8x1xf32>
    %22 = math.rsqrt %21 : vector<8x1xf32>
    %23 = vector.broadcast %22 : vector<8x1xf32> to vector<8x128xf32>
    %24 = arith.mulf %14, %23 : vector<8x128xf32>
    %25 = vector.broadcast %7 : vector<1x128xf32> to vector<8x128xf32>
    %26 = arith.mulf %24, %25 : vector<8x128xf32>
    %27 = vector.broadcast %8 : vector<1x128xf32> to vector<8x128xf32>
    %28 = arith.addf %26, %27 : vector<8x128xf32>
    %cst_14 = arith.constant 0.000000e+00 : f32
    %29 = vector.broadcast %cst_14 : f32 to vector<8x128xf32>
    %30 = arith.maximumf %28, %29 : vector<8x128xf32>
    %31 = arith.truncf %30 : vector<8x128xf32> to vector<8x128xbf16>
    %c0_15 = arith.constant 0 : index
    %c0_16 = arith.constant 0 : index
    %32 = vector.load %arg6[%c0_15, %c0_16] : memref<128x256xbf16, #tpu.memory_space<vmem>>, vector<128x256xbf16>
    %cst_17 = arith.constant dense<0.000000e+00> : vector<8x256xf32>
    %33 = tpu.matmul %31, %32, %cst_17 {dimension_numbers = #tpu.dot_dimension_numbers<[1], [0], [0], [1], [0, 0, 1, 1], [], []>} : vector<8x128xbf16>, vector<128x256xbf16>, vector<8x256xf32> -> vector<8x256xf32>
    %c0_18 = arith.constant 0 : index
    %c0_19 = arith.constant 0 : index
    %34 = vector.load %arg7[%c0_18, %c0_19] : memref<1x256xf32, #tpu.memory_space<vmem>>, vector<1x256xf32>
    %35 = vector.broadcast %34 : vector<1x256xf32> to vector<8x256xf32>
    %36 = arith.addf %33, %35 : vector<8x256xf32>
    %c0_20 = arith.constant 0 : index
    %c0_21 = arith.constant 0 : index
    %37 = vector.load %arg8[%c0_20, %c0_21] : memref<1x256xf32, #tpu.memory_space<vmem>>, vector<1x256xf32>
    %c0_22 = arith.constant 0 : index
    %c0_23 = arith.constant 0 : index
    %38 = vector.load %arg9[%c0_22, %c0_23] : memref<1x256xf32, #tpu.memory_space<vmem>>, vector<1x256xf32>
    %cst_24 = arith.constant dense<0.000000e+00> : vector<8xf32>
    %39 = vector.multi_reduction <add>, %36, %cst_24 [1] : vector<8x256xf32> to vector<8xf32>
    %40 = vector.shape_cast %39 : vector<8xf32> to vector<8x1xf32>
    %cst_25 = arith.constant 2.560000e+02 : f32
    %41 = vector.broadcast %cst_25 : f32 to vector<8x1xf32>
    %42 = arith.divf %40, %41 : vector<8x1xf32>
    %43 = vector.broadcast %42 : vector<8x1xf32> to vector<8x256xf32>
    %44 = arith.subf %36, %43 : vector<8x256xf32>
    %45 = arith.mulf %44, %44 : vector<8x256xf32>
    %cst_26 = arith.constant dense<0.000000e+00> : vector<8xf32>
    %46 = vector.multi_reduction <add>, %45, %cst_26 [1] : vector<8x256xf32> to vector<8xf32>
    %47 = vector.shape_cast %46 : vector<8xf32> to vector<8x1xf32>
    %cst_27 = arith.constant 2.560000e+02 : f32
    %48 = vector.broadcast %cst_27 : f32 to vector<8x1xf32>
    %49 = arith.divf %47, %48 : vector<8x1xf32>
    %cst_28 = arith.constant 9.99999974E-6 : f32
    %50 = vector.broadcast %cst_28 : f32 to vector<8x1xf32>
    %51 = arith.addf %49, %50 : vector<8x1xf32>
    %52 = math.rsqrt %51 : vector<8x1xf32>
    %53 = vector.broadcast %52 : vector<8x1xf32> to vector<8x256xf32>
    %54 = arith.mulf %44, %53 : vector<8x256xf32>
    %55 = vector.broadcast %37 : vector<1x256xf32> to vector<8x256xf32>
    %56 = arith.mulf %54, %55 : vector<8x256xf32>
    %57 = vector.broadcast %38 : vector<1x256xf32> to vector<8x256xf32>
    %58 = arith.addf %56, %57 : vector<8x256xf32>
    %cst_29 = arith.constant 0.000000e+00 : f32
    %59 = vector.broadcast %cst_29 : f32 to vector<8x256xf32>
    %60 = arith.maximumf %58, %59 : vector<8x256xf32>
    %c0_30 = arith.constant 0 : index
    %c0_31 = arith.constant 0 : index
    %61 = vector.load %arg10[%c0_30, %c0_31] : memref<8x256xf32, #tpu.memory_space<vmem>>, vector<8x256xf32>
    tpu.vector_store %arg10[%c0_30, %c0_31], %60 {strides = array<i32>} : memref<8x256xf32, #tpu.memory_space<vmem>>, vector<8x256xf32>,
    return
  }
  func.func @transform_0(%arg0: i32) -> (i32, i32) {
    %c0_i32 = arith.constant 0 : i32
    %c0_i32_0 = arith.constant 0 : i32
    return %arg0, %c0_i32 : i32, i32
  }
  func.func @transform_1(%arg0: i32) -> (i32, i32) {
    %c0_i32 = arith.constant 0 : i32
    %c0_i32_0 = arith.constant 0 : i32
    %c0_i32_1 = arith.constant 0 : i32
    return %c0_i32, %c0_i32_0 : i32, i32
  }
  func.func @transform_2(%arg0: i32) -> (i32, i32) {
    %c0_i32 = arith.constant 0 : i32
    %c0_i32_0 = arith.constant 0 : i32
    %c0_i32_1 = arith.constant 0 : i32
    return %c0_i32, %c0_i32_0 : i32, i32
  }
  func.func @transform_3(%arg0: i32) -> (i32, i32) {
    %c0_i32 = arith.constant 0 : i32
    %c0_i32_0 = arith.constant 0 : i32
    %c0_i32_1 = arith.constant 0 : i32
    return %c0_i32, %c0_i32_0 : i32, i32
  }
  func.func @transform_4(%arg0: i32) -> (i32, i32) {
    %c0_i32 = arith.constant 0 : i32
    %c0_i32_0 = arith.constant 0 : i32
    %c0_i32_1 = arith.constant 0 : i32
    return %c0_i32, %c0_i32_0 : i32, i32
  }
  func.func @transform_5(%arg0: i32) -> (i32, i32) {
    %c0_i32 = arith.constant 0 : i32
    %c0_i32_0 = arith.constant 0 : i32
    %c0_i32_1 = arith.constant 0 : i32
    return %c0_i32, %c0_i32_0 : i32, i32
  }
  func.func @transform_6(%arg0: i32) -> (i32, i32) {
    %c0_i32 = arith.constant 0 : i32
    %c0_i32_0 = arith.constant 0 : i32
    %c0_i32_1 = arith.constant 0 : i32
    return %c0_i32, %c0_i32_0 : i32, i32
  }
  func.func @transform_7(%arg0: i32) -> (i32, i32) {
    %c0_i32 = arith.constant 0 : i32
    %c0_i32_0 = arith.constant 0 : i32
    %c0_i32_1 = arith.constant 0 : i32
    return %c0_i32, %c0_i32_0 : i32, i32
  }
  func.func @transform_8(%arg0: i32) -> (i32, i32) {
    %c0_i32 = arith.constant 0 : i32
    %c0_i32_0 = arith.constant 0 : i32
    %c0_i32_1 = arith.constant 0 : i32
    return %c0_i32, %c0_i32_0 : i32, i32
  }
  func.func @transform_9(%arg0: i32) -> (i32, i32) {
    %c0_i32 = arith.constant 0 : i32
    %c0_i32_0 = arith.constant 0 : i32
    return %arg0, %c0_i32 : i32, i32
  }
}

</mosaic_0001>

<bundles_post_ra>
// kernel: clinical_metadata_encoder.1
= control target key start
LH: loop header
LB: loop body
LE: loop exit
PB: predicated region body
PF: predicated region fallthrough
CT: control target
= control target key end

     0   :  { %vm53_vm0 = vcmask 1044480   ;;  %v390_v0 = vmov 0.0   ;;  %vm391_vm1 = vmmov 0   ;;  %vm49_vm2 = vcmask 80896   ;;  %s521_s1 = inlined_call_operand.vmem [shape: bf16[10,128], index: 1, kind: input, shape index: {}]   ;;  %s522_s0 = inlined_call_operand.vmem [shape: f32[8,10], index: 0, kind: input, shape index: {}]   ;;  %s523_s2 = inlined_call_operand.vmem [shape: f32[1,128], index: 2, kind: input, shape index: {}]   ;;  %s524_s5 = inlined_call_operand.vmem [shape: bf16[128,256], index: 5, kind: input, shape index: {}]   ;;  %s525_s3 = inlined_call_operand.vmem [shape: f32[1,128], index: 3, kind: input, shape index: {}]   ;;  %s526_s4 = inlined_call_operand.vmem [shape: f32[1,128], index: 4, kind: input, shape index: {}]   ;;  %s527_s6 = inlined_call_operand.vmem [shape: f32[1,256], index: 6, kind: input, shape index: {}]   ;;  %s528_s7 = inlined_call_operand.vmem [shape: f32[1,256], index: 7, kind: input, shape index: {}]   ;;  %s529_s8 = inlined_call_operand.vmem [shape: f32[1,256], index: 8, kind: input, shape index: {}]   ;;  %s530_s9 = inlined_call_operand.vmem [shape: f32[8,256], index: 9, kind: output, shape index: {}]  }
   0x1   :  { %352 = vmatprep.subr.bf16.mxu0 %v390_v0  ;;  %v361_v1 = vld [vmem:[%s521_s1] sm:$0x1f]   ;;  %354 = vmatprep.mubr.msk.bf16.mxu0 %vm391_vm1, %v390_v0  ;;  %v365_v13 = vld [vmem:[%s524_s5 + $0x14] ss:$8 sps:$4 sm:$0xff]   ;;  %v367_v14 = vld [vmem:[%s524_s5 + $0x10] ss:$8 sps:$4 sm:$0xff]   ;;  %v145_v43 = vlaneseq }
   0x2   :  { %v33_v2 = vld [vmem:[%s522_s0] sm:$0xff]  ;;  %v55_v3 = vsel %vm53_vm0, %v361_v1, 0  ;;  %v371_v21 = vld [vmem:[%s524_s5 + $0x34] ss:$8 sps:$4 sm:$0xff]   ;;  %v373_v22 = vld [vmem:[%s524_s5 + $0x30] ss:$8 sps:$4 sm:$0xff]  }
   0x3   :  { %v34_v4 = vpack.c.bf16 %v33_v2, %v33_v2  ;;  %353 = vmatpush3.bf16.msra.mxu0 %v55_v3  ;;  %v329_v5 = vld [vmem:[%s523_s2] ss:$0 sm:$0xff]  ;;  %v362_v11 = vld [vmem:[%s524_s5 + $0x4] ss:$8 sps:$4 sm:$0xff]   ;;  %v377_v25 = vld [vmem:[%s524_s5 + $0x54] ss:$8 sps:$4 sm:$0xff]  }
   0x4   :  { %v364_v12 = vld [vmem:[%s524_s5] ss:$8 sps:$4 sm:$0xff]   ;;  %235 = vmatprep.subr.bf16.mxu1 %v362_v11  ;;  %v368_v19 = vld [vmem:[%s524_s5 + $0x24] ss:$8 sps:$4 sm:$0xff]   ;;  %v392_v26 = vmov 0   ;;  %v146_v44 = vshrl.u32 %v145_v43, 7 }
   0x5   :  { %236 = vmatpush1.bf16.msra.mxu1 %v364_v12  ;;  %v370_v20 = vld [vmem:[%s524_s5 + $0x20] ss:$8 sps:$4 sm:$0xff]   ;;  %v374_v23 = vld [vmem:[%s524_s5 + $0x44] ss:$8 sps:$4 sm:$0xff]   ;;  %267 = vmatprep.mubr.bf16.mxu1 %v392_v26  ;;  %v379_v27 = vld [vmem:[%s524_s5 + $0x50] ss:$8 sps:$4 sm:$0xff]  }
   0x6   :  { %355 = vmatmul.mubr.msk.bf16.vlgmr.msra.gmra.mrb[0].mxu0 %vm49_vm2, %v34_v4  ;;  %237 = vmatprep.subr.bf16.mxu1 %v365_v13  ;;  %v376_v24 = vld [vmem:[%s524_s5 + $0x40] ss:$8 sps:$4 sm:$0xff]   ;;  %v380_v28 = vld [vmem:[%s524_s5 + $0x64] ss:$8 sps:$4 sm:$0xff]   ;;  %v383_v30 = vld [vmem:[%s524_s5 + $0x74] ss:$8 sps:$4 sm:$0xff]  }
   0x7   :  { %v382_v29 = vld [vmem:[%s524_s5 + $0x60] ss:$8 sps:$4 sm:$0xff]   ;;  %v385_v31 = vld [vmem:[%s524_s5 + $0x70] ss:$8 sps:$4 sm:$0xff]   ;;  %v147_v45 = vsub.s32 0, %v146_v44  ;;  %v151_v47 = vsub.s32 1, %v146_v44 }
   0x8   :  { %v332_v36 = vld [vmem:[%s525_s3] ss:$0 sm:$0xff] }
   0x9   :  { %238 = vmatpush1.bf16.msra.mxu1 %v367_v14  ;;  %v333_v38 = vld [vmem:[%s526_s4] ss:$0 sm:$0xff] }
   0xa   :  { %239 = vmatprep.subr.bf16.mxu1 %v368_v19  ;;  %v143_v46 = vld [vmem:[%s527_s6] sm:$0x3] }
   0xb   :  { %v148_v48 = vrot.slane %v143_v46, %v147_v45  ;;  %v152_v49 = vrot.slane %v143_v46, %v151_v47  ;;  %v276_v3 = vld [vmem:[%s528_s7] sm:$0x3] }
   0xc   :  { %v277_v4 = vld [vmem:[%s529_s8] sm:$0x3] }
   0xd   :  { %240 = vmatpush1.bf16.msra.mxu1 %v370_v20 }
   0xe   :  { %241 = vmatprep.subr.bf16.mxu1 %v371_v21 }
  0x11   :  { %242 = vmatpush1.bf16.msra.mxu1 %v373_v22 }
  0x12   :  { %243 = vmatprep.subr.bf16.mxu1 %v374_v23 }
  0x15   :  { %244 = vmatpush1.bf16.msra.mxu1 %v376_v24 }
  0x16   :  { %245 = vmatprep.subr.bf16.mxu1 %v377_v25 }
  0x19   :  { %246 = vmatpush1.bf16.msra.mxu1 %v379_v27 }
  0x1a   :  { %247 = vmatprep.subr.bf16.mxu1 %v380_v28 }
  0x1d   :  { %248 = vmatpush1.bf16.msra.mxu1 %v382_v29 }
  0x1e   :  { %249 = vmatprep.subr.bf16.mxu1 %v383_v30 }
  0x21   :  { %250 = vmatpush1.bf16.msra.mxu1 %v385_v31 }
  0xd9   :  { %v91_v6 = vpop.f32.mrb[0].mxu0 }
  0xda   :  { %v92_v7 = vadd.f32 %v329_v5, %v91_v6  ;;  %v356_v8 = vpop.f32.mrb[1].mxu0  ;;  %v299_v5 = vrot.slane %v276_v3, %v147_v45  ;;  %v303_v6 = vrot.slane %v276_v3, %v151_v47 }
  0xdb   :  { %v94_v9 = vpop.f32.mrb[2].mxu0  ;;  %v312_v8 = vrot.slane %v277_v4, %v147_v45 }
  0xdc   :  { %99 = vadd.xlane.f32.xlu0 %v92_v7  ;;  %v357_v10 = vpop.f32.mrb[3].mxu0  ;;  %v316_v9 = vrot.slane %v277_v4, %v151_v47 }
 0x169   :  { %v100_v15 = vpop.xlane.xlu0 %99 }
 0x16a   :  { %v102_v16 = vmul.f32 0.0078125, %v100_v15 }
 0x16c   :  { %v103_v17 = vsub.f32 %v92_v7, %v102_v16 }
 0x16e   :  { %v104_v18 = vmul.f32 %v103_v17, %v103_v17 }
 0x170   :  { %105 = vadd.xlane.f32.xlu0 %v104_v18 }
 0x1fd   :  { %v106_v32 = vpop.xlane.xlu0 %105 }
 0x1fe   :  { %v107_v33 = vmul.f32 0.0078125, %v106_v32 }
 0x200   :  { %v108_v34 = vadd.f32 1e-05, %v107_v33 }
 0x202   :  { %386 = vrsqrt.f32 %v108_v34 }
 0x20c   :  { %v387_v35 = vpop.eup %386 }
 0x20d   :  { %v110_v37 = vmul.f32 %v387_v35, %v103_v17 }
 0x20f   :  { %v117_v39 = vmul.f32 %v332_v36, %v110_v37 }
 0x211   :  { %v124_v40 = vadd.f32 %v333_v38, %v117_v39 }
 0x213   :  { %v125_v41 = vmax.f32 %v124_v40, 0.0 }
 0x215   :  { %v126_v42 = vpack.c.bf16 %v125_v41, %v125_v41 }
 0x217   :  { %268 = vmatmul.mubr.bf16.vlgmr.msra.gmra.mrb[0].mxu1 %v126_v42 }
 0x2ea   :  { %v269_v50 = vpop.f32.mrb[0].mxu1 }
 0x2eb   :  { %v270_v51 = vadd.f32 %v269_v50, %v148_v48  ;;  %v271_v52 = vpop.f32.mrb[1].mxu1 }
 0x2ec   :  { %v272_v53 = vadd.f32 %v271_v52, %v152_v49  ;;  %v273_v54 = vpop.f32.mrb[2].mxu1 }
 0x2ed   :  { %v274_v55 = vpop.f32.mrb[3].mxu1 }
 0x2ee   :  { %v278_v56 = vadd.f32 %v272_v53, %v270_v51 }
 0x2f0   :  { %279 = vadd.xlane.f32.xlu1 %v278_v56 }
 0x37d   :  { %v280_v57 = vpop.xlane.xlu1 %279 }
 0x37e   :  { %v282_v58 = vmul.f32 0.00390625, %v280_v57 }
 0x380   :  { %v283_v59 = vsub.f32 %v270_v51, %v282_v58  ;;  %v284_v60 = vsub.f32 %v272_v53, %v282_v58 }
 0x382   :  { %v285_v61 = vmul.f32 %v283_v59, %v283_v59  ;;  %v286_v62 = vmul.f32 %v284_v60, %v284_v60 }
 0x384   :  { %v287_v63 = vadd.f32 %v286_v62, %v285_v61 }
 0x386   :  { %288 = vadd.xlane.f32.xlu1 %v287_v63 }
 0x413   :  { %v289_v0 = vpop.xlane.xlu1 %288 }
 0x414   :  { %v290_v1 = vmul.f32 0.00390625, %v289_v0 }
 0x416   :  { %v291_v2 = vadd.f32 1e-05, %v290_v1 }
 0x418   :  { %388 = vrsqrt.f32 %v291_v2 }
 0x422   :  { %v389_v7 = vpop.eup %388 }
 0x423   :  { %v293_v10 = vmul.f32 %v389_v7, %v283_v59  ;;  %v294_v11 = vmul.f32 %v389_v7, %v284_v60 }
 0x425   :  { %v306_v12 = vmul.f32 %v299_v5, %v293_v10  ;;  %v307_v13 = vmul.f32 %v303_v6, %v294_v11 }
 0x427   :  { %v319_v14 = vadd.f32 %v312_v8, %v306_v12  ;;  %v320_v15 = vadd.f32 %v316_v9, %v307_v13 }
 0x429   :  { %v321_v16 = vmax.f32 %v319_v14, 0.0  ;;  %v322_v17 = vmax.f32 %v320_v15, 0.0 }
 0x42b   :  { %323 = vst [vmem:[%s530_s9] sm:$0xff] %v321_v16  ;;  %324 = vst [vmem:[%s530_s9 + $0x8] sm:$0xff] %v322_v17 }

</bundles_post_ra>
